<compile_context>
chip_gen: v5e
topology: v5e:2x2
jax: 0.10.0
libtpu: 0.0.40
codegen_flags: <defaults>
</compile_context>

<pallas_src>
from functools import partial

import jax
import jax.numpy as jnp
from jax.experimental import pallas as pl
from jax.experimental.pallas import tpu as pltpu


# ----------------------------------------------------------------------------
# Fused kernel: pre_split linear -> per-head gating softmax -> top-k routing ->
# expert fc2 (all experts/heads in one matmul) -> residual -> align linear.
# ----------------------------------------------------------------------------
def _fused_kernel(x_ref, wp_ref, bp_ref, wg_ref, bg_ref, we_ref, be_ref,
                  sel_ref, wa_ref, ba_ref, o_ref, *,
                  num_heads, num_experts, top_k):
    H, NE = num_heads, num_experts
    x = x_ref[...].astype(jnp.float32)                                  # (TM, E)
    E = x.shape[-1]

    # pre_split_projection
    y = jnp.dot(x, wp_ref[...], preferred_element_type=jnp.float32) + bp_ref[...]

    # gating for all heads at once via block-diagonal slab: (TM, H*NE)
    gate = jnp.dot(y, wg_ref[...], preferred_element_type=jnp.float32) + bg_ref[...]

    # per-head routing: softmax over NE -> top-k mask -> softmax over selected.
    # H, NE, top_k are tiny compile-time constants -> fully unrolled VPU/XLU
    # work on a (TM, H*NE) slab; negligible next to the MXU matmuls, and
    # numerically self-consistent so top-k decisions track the scores exactly.
    neg_inf = jnp.float32(-jnp.inf)
    idx = jax.lax.broadcasted_iota(jnp.int32, (x.shape[0], NE), 1)      # hoisted out of loop
    wgt_blocks = []
    for h in range(H):                                                  # static, tiny
        g = gate[:, h * NE:(h + 1) * NE]                                # (TM, NE)
        gmax = jnp.max(g, axis=-1, keepdims=True)
        ez = jnp.exp(g - gmax)
        p = ez / jnp.sum(ez, axis=-1, keepdims=True)                    # softmax scores

        sel = jnp.zeros(p.shape, dtype=jnp.bool_)
        remaining = p
        for _ in range(top_k):                                          # static, tiny
            cur = jnp.max(remaining, axis=-1, keepdims=True)
            ismax = remaining == cur
            first = jnp.min(jnp.where(ismax, idx, NE), axis=-1, keepdims=True)
            pick = idx == first                                         # ties -> lowest idx
            sel = sel | pick
            remaining = jnp.where(pick, neg_inf, remaining)

        # softmax over the selected scores; p in (0,1] so exp(p) needs no
        # max-subtraction (identical result, one fewer segment max per head).
        esel = jnp.where(sel, jnp.exp(p), jnp.float32(0.0))
        wgt_blocks.append(esel / jnp.sum(esel, axis=-1, keepdims=True))
    wgt = jnp.concatenate(wgt_blocks, axis=-1)                          # (TM, H*NE)

    # all (expert, head) fc2 outputs in one lane-dense matmul: (TM, NE*E)
    eo = jnp.dot(y, we_ref[...], preferred_element_type=jnp.float32) + be_ref[...]
    # expand routing weights to lane positions e*E + h*D + d via 0/1 matmul
    wexp = jnp.dot(wgt, sel_ref[...], preferred_element_type=jnp.float32)  # (TM, NE*E)
    weighted = wexp * eo

    acc = jnp.zeros_like(y)
    for e in range(NE):                                                 # static, tiny
        acc = acc + weighted[:, e * E:(e + 1) * E]

    moe = y + acc                                                       # residual add

    # align: Linear(E, 256)  (output is lane-dense: 256 lanes)
    out = jnp.dot(moe, wa_ref[...], preferred_element_type=jnp.float32) + ba_ref[...]
    o_ref[...] = out.astype(o_ref.dtype)


def _pick_row_tile(n_rows, target=512):
    """Largest row tile (multiple of 8) <= target, preferring >=2 grid steps."""
    tm = min(target, n_rows)
    tm = max(8, (tm // 8) * 8)
    if pl.cdiv(n_rows, tm) < 2 and n_rows > 8:   # keep both v7x TensorCores busy
        tm = max(8, (pl.cdiv(n_rows, 2) // 8) * 8)
    return tm


def smoe_mha_enc_forward(x, packed, *, num_heads, num_experts, top_k, row_tile=512):
    B, S, E = x.shape
    assert E % num_heads == 0
    n_rows = B * S
    tm = _pick_row_tile(n_rows, row_tile)
    padded = pl.cdiv(n_rows, tm) * tm

    xf = x.reshape(n_rows, E)
    if padded != n_rows:
        xf = jnp.pad(xf, ((0, padded - n_rows), (0, 0)))

    HNE = num_heads * num_experts
    NEE = num_experts * E
    kernel = partial(_fused_kernel, num_heads=num_heads,
                     num_experts=num_experts, top_k=top_k)

    out = pl.pallas_call(
        kernel,
        out_shape=jax.ShapeDtypeStruct((padded, 256), x.dtype),
        grid=(padded // tm,),
        in_specs=[
            pl.BlockSpec((tm, E), lambda i: (i, 0)),        # x tile
            pl.BlockSpec((E, E), lambda i: (0, 0)),         # wp
            pl.BlockSpec((1, E), lambda i: (0, 0)),         # bp
            pl.BlockSpec((E, HNE), lambda i: (0, 0)),       # wg (block-diag slab)
            pl.BlockSpec((1, HNE), lambda i: (0, 0)),       # bg (tiled per head)
            pl.BlockSpec((E, NEE), lambda i: (0, 0)),       # we slab (block-diag per expert)
            pl.BlockSpec((1, NEE), lambda i: (0, 0)),       # be slab
            pl.BlockSpec((HNE, NEE), lambda i: (0, 0)),     # 0/1 weight-expansion matrix
            pl.BlockSpec((E, 256), lambda i: (0, 0)),       # wa
            pl.BlockSpec((1, 256), lambda i: (0, 0)),       # ba
        ],
        out_specs=pl.BlockSpec((tm, 256), lambda i: (i, 0)),
        compiler_params=pltpu.CompilerParams(dimension_semantics=("parallel",)),
    )(xf, packed["wp"], packed["bp"], packed["wg_bd"], packed["bg_t"],
      packed["we_slab"], packed["be_slab"], packed["sel"],
      packed["wa"], packed["ba"])

    return out[:n_rows].reshape(B, S, 256)


# ----------------------------------------------------------------------------
# Host-side weight packing: block-diagonal per-head slabs (lane-dense in VMEM)
# ----------------------------------------------------------------------------
def pack_params(params, *, num_heads):
    E = params["wp"].shape[0]
    H = num_heads
    D = E // H
    NE = params["we"].shape[0]

    wg_bd = jnp.zeros((E, H * NE), jnp.float32)
    for h in range(H):
        wg_bd = wg_bd.at[h * D:(h + 1) * D, h * NE:(h + 1) * NE].set(params["wg"])
    bg_t = jnp.tile(params["bg"], (H,)).reshape(1, H * NE)

    we_slab = jnp.zeros((E, NE * E), jnp.float32)
    for e in range(NE):
        for h in range(H):
            we_slab = we_slab.at[h * D:(h + 1) * D,
                                 e * E + h * D:e * E + (h + 1) * D].set(params["we"][e])
    be_slab = jnp.tile(params["be"][:, None, :], (1, H, 1)).reshape(1, NE * E)

    sel = jnp.zeros((H * NE, NE * E), jnp.float32)
    for h in range(H):
        for e in range(NE):
            sel = sel.at[h * NE + e, e * E + h * D:e * E + (h + 1) * D].set(1.0)

    return dict(
        wp=params["wp"], bp=params["bp"].reshape(1, E),
        wg_bd=wg_bd, bg_t=bg_t,
        we_slab=we_slab, be_slab=be_slab, sel=sel,
        wa=params["wa"], ba=params["ba"].reshape(1, 256),
    )


# ----------------------------------------------------------------------------
# Deterministic parameter init (PyTorch nn.Linear-style uniform bounds)
# ----------------------------------------------------------------------------
def init_params(key, E, hidden_dim, num_experts, num_heads):
    D = E // num_heads
    assert hidden_dim == D, "Expert.forward == fc2(x) requires hidden_dim == head_dim"
    ks = jax.random.split(key, 4)

    def lin(k, fan_in, fan_out):
        kw, kb = jax.random.split(k)
        bound = 1.0 / jnp.sqrt(jnp.float32(fan_in))
        w = jax.random.uniform(kw, (fan_in, fan_out), jnp.float32, -bound, bound)
        b = jax.random.uniform(kb, (fan_out,), jnp.float32, -bound, bound)
        return w, b

    wp, bp = lin(ks[0], E, E)                    # pre_split_projection
    wg, bg = lin(ks[1], D, num_experts)          # gating_network.fc
    we_list, be_list = [], []
    for i in range(num_experts):                 # experts[i].fc2 (fc1 is dead code)
        w, b = lin(jax.random.fold_in(ks[2], i), hidden_dim, D)
        we_list.append(w)
        be_list.append(b)
    wa, ba = lin(ks[3], E, 256)                  # align
    return dict(wp=wp, bp=bp, wg=wg, bg=bg,
                we=jnp.stack(we_list), be=jnp.stack(be_list),
                wa=wa, ba=ba)


# ----------------------------------------------------------------------------
# Pure-JAX reference following the original three-stage formulation (with the
# permutes) — used only as a correctness check of the fused/layout-free kernel.
# ----------------------------------------------------------------------------
def _reference_forward(x, params, *, num_heads, top_k):
    B, S, E = x.shape
    D = E // num_heads
    NE = params["we"].shape[0]
    hi = jax.lax.Precision.HIGHEST

    y = jnp.dot(x.reshape(B * S, E), params["wp"], precision=hi) + params["bp"]
    xh = y.reshape(B, S, num_heads, D).transpose(0, 2, 1, 3).reshape(B * num_heads, S, D)

    gate = jnp.dot(xh, params["wg"], precision=hi) + params["bg"]
    p = jax.nn.softmax(gate, axis=-1)
    topv, topi = jax.lax.top_k(p, top_k)
    w = jax.nn.softmax(topv, axis=-1)

    all_out = jnp.stack(
        [jnp.dot(xh, params["we"][e], precision=hi) + params["be"][e] for e in range(NE)],
        axis=2)                                                        # (B*h, S, NE, D)
    selected = jnp.take_along_axis(all_out, topi[..., None], axis=2)
    moe = (selected * w[..., None]).sum(axis=2)
    xh = xh + moe

    yo = xh.reshape(B, num_heads, S, D).transpose(0, 2, 1, 3).reshape(B * S, E)
    out = jnp.dot(yo, params["wa"], precision=hi) + params["ba"]
    return out.reshape(B, S, 256)


if __name__ == "__main__":
    B, S, E = 2, 8, 32
    num_heads, num_experts, top_k = 4, 4, 2
    hidden_dim = E // num_heads   # must equal head_dim (see semantics note above)

    key = jax.random.PRNGKey(0)
    kx, kp = jax.random.split(key)
    x = jax.random.normal(kx, (B, S, E), dtype=jnp.float32)
    params = init_params(kp, E, hidden_dim, num_experts, num_heads)
    packed = pack_params(params, num_heads=num_heads)

    out = smoe_mha_enc_forward(x, packed, num_heads=num_heads,
                               num_experts=num_experts, top_k=top_k)
    jax.block_until_ready(out)
    assert out.shape == (B, S, 256) and out.dtype == jnp.float32

    ref = _reference_forward(x, params, num_heads=num_heads, top_k=top_k)
    err = float(jnp.max(jnp.abs(out - ref)))
    assert jnp.allclose(out, ref, rtol=5e-3, atol=5e-3), f"max abs err {err}"

    print("KERNEL_OK")
</pallas_src>

<mosaic_0001>
module attributes {stable_mosaic.version = 11 : i64} {
  func.func @_fused_kernel(%arg0: i32, %arg1: memref<8x32xf32, #tpu.memory_space<vmem>>, %arg2: memref<32x32xf32, #tpu.memory_space<vmem>>, %arg3: memref<1x32xf32, #tpu.memory_space<vmem>>, %arg4: memref<32x16xf32, #tpu.memory_space<vmem>>, %arg5: memref<1x16xf32, #tpu.memory_space<vmem>>, %arg6: memref<32x128xf32, #tpu.memory_space<vmem>>, %arg7: memref<1x128xf32, #tpu.memory_space<vmem>>, %arg8: memref<16x128xf32, #tpu.memory_space<vmem>>, %arg9: memref<32x256xf32, #tpu.memory_space<vmem>>, %arg10: memref<1x256xf32, #tpu.memory_space<vmem>>, %arg11: memref<8x256xf32, #tpu.memory_space<vmem>>) attributes {dimension_semantics = [#tpu.dimension_semantics<parallel>], iteration_bounds = array<i64: 2>, scalar_prefetch = 0 : i64, scratch_operands = 0 : i64, tpu.core_type = #tpu.core_type<tc>, window_params = [{transform_indices = @transform_0, window_bounds = array<i64: 8, 32>}, {pipeline_mode = #tpu.pipeline_mode<synchronous>, transform_indices = @transform_1, window_bounds = array<i64: 32, 32>}, {pipeline_mode = #tpu.pipeline_mode<synchronous>, transform_indices = @transform_2, window_bounds = array<i64: 1, 32>}, {pipeline_mode = #tpu.pipeline_mode<synchronous>, transform_indices = @transform_3, window_bounds = array<i64: 32, 16>}, {pipeline_mode = #tpu.pipeline_mode<synchronous>, transform_indices = @transform_4, window_bounds = array<i64: 1, 16>}, {pipeline_mode = #tpu.pipeline_mode<synchronous>, transform_indices = @transform_5, window_bounds = array<i64: 32, 128>}, {pipeline_mode = #tpu.pipeline_mode<synchronous>, transform_indices = @transform_6, window_bounds = array<i64: 1, 128>}, {pipeline_mode = #tpu.pipeline_mode<synchronous>, transform_indices = @transform_7, window_bounds = array<i64: 16, 128>}, {pipeline_mode = #tpu.pipeline_mode<synchronous>, transform_indices = @transform_8, window_bounds = array<i64: 32, 256>}, {pipeline_mode = #tpu.pipeline_mode<synchronous>, transform_indices = @transform_9, window_bounds = array<i64: 1, 256>}, {transform_indices = @transform_10, window_bounds = array<i64: 8, 256>}]} {
    %c0 = arith.constant 0 : index
    %c0_0 = arith.constant 0 : index
    %0 = vector.load %arg1[%c0, %c0_0] : memref<8x32xf32, #tpu.memory_space<vmem>>, vector<8x32xf32>
    %c0_1 = arith.constant 0 : index
    %c0_2 = arith.constant 0 : index
    %1 = vector.load %arg2[%c0_1, %c0_2] : memref<32x32xf32, #tpu.memory_space<vmem>>, vector<32x32xf32>
    %cst = arith.constant dense<0.000000e+00> : vector<8x32xf32>
    %2 = tpu.matmul %0, %1, %cst {dimension_numbers = #tpu.dot_dimension_numbers<[1], [0], [0], [1], [0, 0, 1, 1], [], []>} : vector<8x32xf32>, vector<32x32xf32>, vector<8x32xf32> -> vector<8x32xf32>
    %c0_3 = arith.constant 0 : index
    %c0_4 = arith.constant 0 : index
    %3 = vector.load %arg3[%c0_3, %c0_4] : memref<1x32xf32, #tpu.memory_space<vmem>>, vector<1x32xf32>
    %4 = vector.broadcast %3 : vector<1x32xf32> to vector<8x32xf32>
    %5 = arith.addf %2, %4 : vector<8x32xf32>
    %c0_5 = arith.constant 0 : index
    %c0_6 = arith.constant 0 : index
    %6 = vector.load %arg4[%c0_5, %c0_6] : memref<32x16xf32, #tpu.memory_space<vmem>>, vector<32x16xf32>
    %cst_7 = arith.constant dense<0.000000e+00> : vector<8x16xf32>
    %7 = tpu.matmul %5, %6, %cst_7 {dimension_numbers = #tpu.dot_dimension_numbers<[1], [0], [0], [1], [0, 0, 1, 1], [], []>} : vector<8x32xf32>, vector<32x16xf32>, vector<8x16xf32> -> vector<8x16xf32>
    %c0_8 = arith.constant 0 : index
    %c0_9 = arith.constant 0 : index
    %8 = vector.load %arg5[%c0_8, %c0_9] : memref<1x16xf32, #tpu.memory_space<vmem>>, vector<1x16xf32>
    %9 = vector.broadcast %8 : vector<1x16xf32> to vector<8x16xf32>
    %10 = arith.addf %7, %9 : vector<8x16xf32>
    %11 = tpu.iota {dimensions = array<i32: 1>} : vector<8x4xi32>
    %12 = vector.extract_strided_slice %10 {offsets = [0, 0], sizes = [8, 4], strides = [1, 1]} : vector<8x16xf32> to vector<8x4xf32>
    %cst_10 = arith.constant dense<0xFF800000> : vector<8xf32>
    %13 = vector.multi_reduction <maximumf>, %12, %cst_10 [1] : vector<8x4xf32> to vector<8xf32>
    %14 = vector.shape_cast %13 : vector<8xf32> to vector<8x1xf32>
    %15 = vector.broadcast %14 : vector<8x1xf32> to vector<8x4xf32>
    %16 = arith.subf %12, %15 : vector<8x4xf32>
    %17 = math.exp %16 : vector<8x4xf32>
    %cst_11 = arith.constant dense<0.000000e+00> : vector<8xf32>
    %18 = vector.multi_reduction <add>, %17, %cst_11 [1] : vector<8x4xf32> to vector<8xf32>
    %19 = vector.shape_cast %18 : vector<8xf32> to vector<8x1xf32>
    %20 = vector.broadcast %19 : vector<8x1xf32> to vector<8x4xf32>
    %21 = arith.divf %17, %20 : vector<8x4xf32>
    %false = arith.constant false
    %22 = vector.broadcast %false : i1 to vector<8x4xi1>
    %cst_12 = arith.constant dense<0xFF800000> : vector<8xf32>
    %23 = vector.multi_reduction <maximumf>, %21, %cst_12 [1] : vector<8x4xf32> to vector<8xf32>
    %24 = vector.shape_cast %23 : vector<8xf32> to vector<8x1xf32>
    %25 = vector.broadcast %24 : vector<8x1xf32> to vector<8x4xf32>
    %26 = arith.cmpf oeq, %21, %25 : vector<8x4xf32>
    %c4_i32 = arith.constant 4 : i32
    %27 = vector.broadcast %c4_i32 : i32 to vector<8x4xi32>
    %28 = arith.select %26, %11, %27 : vector<8x4xi1>, vector<8x4xi32>
    %cst_13 = arith.constant dense<2147483647> : vector<8xi32>
    %29 = vector.multi_reduction <minsi>, %28, %cst_13 [1] : vector<8x4xi32> to vector<8xi32>
    %30 = vector.shape_cast %29 : vector<8xi32> to vector<8x1xi32>
    %31 = vector.broadcast %30 : vector<8x1xi32> to vector<8x4xi32>
    %32 = arith.cmpi eq, %11, %31 : vector<8x4xi32>
    %33 = arith.ori %22, %32 : vector<8x4xi1>
    %cst_14 = arith.constant 0xFF800000 : f32
    %34 = vector.broadcast %cst_14 : f32 to vector<8x4xf32>
    %35 = arith.select %32, %34, %21 : vector<8x4xi1>, vector<8x4xf32>
    %cst_15 = arith.constant dense<0xFF800000> : vector<8xf32>
    %36 = vector.multi_reduction <maximumf>, %35, %cst_15 [1] : vector<8x4xf32> to vector<8xf32>
    %37 = vector.shape_cast %36 : vector<8xf32> to vector<8x1xf32>
    %38 = vector.broadcast %37 : vector<8x1xf32> to vector<8x4xf32>
    %39 = arith.cmpf oeq, %35, %38 : vector<8x4xf32>
    %c4_i32_16 = arith.constant 4 : i32
    %40 = vector.broadcast %c4_i32_16 : i32 to vector<8x4xi32>
    %41 = arith.select %39, %11, %40 : vector<8x4xi1>, vector<8x4xi32>
    %cst_17 = arith.constant dense<2147483647> : vector<8xi32>
    %42 = vector.multi_reduction <minsi>, %41, %cst_17 [1] : vector<8x4xi32> to vector<8xi32>
    %43 = vector.shape_cast %42 : vector<8xi32> to vector<8x1xi32>
    %44 = vector.broadcast %43 : vector<8x1xi32> to vector<8x4xi32>
    %45 = arith.cmpi eq, %11, %44 : vector<8x4xi32>
    %46 = arith.ori %33, %45 : vector<8x4xi1>
    %47 = math.exp %21 : vector<8x4xf32>
    %cst_18 = arith.constant 0.000000e+00 : f32
    %48 = vector.broadcast %cst_18 : f32 to vector<8x4xf32>
    %49 = arith.select %46, %47, %48 : vector<8x4xi1>, vector<8x4xf32>
    %cst_19 = arith.constant dense<0.000000e+00> : vector<8xf32>
    %50 = vector.multi_reduction <add>, %49, %cst_19 [1] : vector<8x4xf32> to vector<8xf32>
    %51 = vector.shape_cast %50 : vector<8xf32> to vector<8x1xf32>
    %52 = vector.broadcast %51 : vector<8x1xf32> to vector<8x4xf32>
    %53 = arith.divf %49, %52 : vector<8x4xf32>
    %54 = vector.extract_strided_slice %10 {offsets = [0, 4], sizes = [8, 4], strides = [1, 1]} : vector<8x16xf32> to vector<8x4xf32>
    %cst_20 = arith.constant dense<0xFF800000> : vector<8xf32>
    %55 = vector.multi_reduction <maximumf>, %54, %cst_20 [1] : vector<8x4xf32> to vector<8xf32>
    %56 = vector.shape_cast %55 : vector<8xf32> to vector<8x1xf32>
    %57 = vector.broadcast %56 : vector<8x1xf32> to vector<8x4xf32>
    %58 = arith.subf %54, %57 : vector<8x4xf32>
    %59 = math.exp %58 : vector<8x4xf32>
    %cst_21 = arith.constant dense<0.000000e+00> : vector<8xf32>
    %60 = vector.multi_reduction <add>, %59, %cst_21 [1] : vector<8x4xf32> to vector<8xf32>
    %61 = vector.shape_cast %60 : vector<8xf32> to vector<8x1xf32>
    %62 = vector.broadcast %61 : vector<8x1xf32> to vector<8x4xf32>
    %63 = arith.divf %59, %62 : vector<8x4xf32>
    %false_22 = arith.constant false
    %64 = vector.broadcast %false_22 : i1 to vector<8x4xi1>
    %cst_23 = arith.constant dense<0xFF800000> : vector<8xf32>
    %65 = vector.multi_reduction <maximumf>, %63, %cst_23 [1] : vector<8x4xf32> to vector<8xf32>
    %66 = vector.shape_cast %65 : vector<8xf32> to vector<8x1xf32>
    %67 = vector.broadcast %66 : vector<8x1xf32> to vector<8x4xf32>
    %68 = arith.cmpf oeq, %63, %67 : vector<8x4xf32>
    %c4_i32_24 = arith.constant 4 : i32
    %69 = vector.broadcast %c4_i32_24 : i32 to vector<8x4xi32>
    %70 = arith.select %68, %11, %69 : vector<8x4xi1>, vector<8x4xi32>
    %cst_25 = arith.constant dense<2147483647> : vector<8xi32>
    %71 = vector.multi_reduction <minsi>, %70, %cst_25 [1] : vector<8x4xi32> to vector<8xi32>
    %72 = vector.shape_cast %71 : vector<8xi32> to vector<8x1xi32>
    %73 = vector.broadcast %72 : vector<8x1xi32> to vector<8x4xi32>
    %74 = arith.cmpi eq, %11, %73 : vector<8x4xi32>
    %75 = arith.ori %64, %74 : vector<8x4xi1>
    %cst_26 = arith.constant 0xFF800000 : f32
    %76 = vector.broadcast %cst_26 : f32 to vector<8x4xf32>
    %77 = arith.select %74, %76, %63 : vector<8x4xi1>, vector<8x4xf32>
    %cst_27 = arith.constant dense<0xFF800000> : vector<8xf32>
    %78 = vector.multi_reduction <maximumf>, %77, %cst_27 [1] : vector<8x4xf32> to vector<8xf32>
    %79 = vector.shape_cast %78 : vector<8xf32> to vector<8x1xf32>
    %80 = vector.broadcast %79 : vector<8x1xf32> to vector<8x4xf32>
    %81 = arith.cmpf oeq, %77, %80 : vector<8x4xf32>
    %c4_i32_28 = arith.constant 4 : i32
    %82 = vector.broadcast %c4_i32_28 : i32 to vector<8x4xi32>
    %83 = arith.select %81, %11, %82 : vector<8x4xi1>, vector<8x4xi32>
    %cst_29 = arith.constant dense<2147483647> : vector<8xi32>
    %84 = vector.multi_reduction <minsi>, %83, %cst_29 [1] : vector<8x4xi32> to vector<8xi32>
    %85 = vector.shape_cast %84 : vector<8xi32> to vector<8x1xi32>
    %86 = vector.broadcast %85 : vector<8x1xi32> to vector<8x4xi32>
    %87 = arith.cmpi eq, %11, %86 : vector<8x4xi32>
    %88 = arith.ori %75, %87 : vector<8x4xi1>
    %89 = math.exp %63 : vector<8x4xf32>
    %cst_30 = arith.constant 0.000000e+00 : f32
    %90 = vector.broadcast %cst_30 : f32 to vector<8x4xf32>
    %91 = arith.select %88, %89, %90 : vector<8x4xi1>, vector<8x4xf32>
    %cst_31 = arith.constant dense<0.000000e+00> : vector<8xf32>
    %92 = vector.multi_reduction <add>, %91, %cst_31 [1] : vector<8x4xf32> to vector<8xf32>
    %93 = vector.shape_cast %92 : vector<8xf32> to vector<8x1xf32>
    %94 = vector.broadcast %93 : vector<8x1xf32> to vector<8x4xf32>
    %95 = arith.divf %91, %94 : vector<8x4xf32>
    %96 = vector.extract_strided_slice %10 {offsets = [0, 8], sizes = [8, 4], strides = [1, 1]} : vector<8x16xf32> to vector<8x4xf32>
    %cst_32 = arith.constant dense<0xFF800000> : vector<8xf32>
    %97 = vector.multi_reduction <maximumf>, %96, %cst_32 [1] : vector<8x4xf32> to vector<8xf32>
    %98 = vector.shape_cast %97 : vector<8xf32> to vector<8x1xf32>
    %99 = vector.broadcast %98 : vector<8x1xf32> to vector<8x4xf32>
    %100 = arith.subf %96, %99 : vector<8x4xf32>
    %101 = math.exp %100 : vector<8x4xf32>
    %cst_33 = arith.constant dense<0.000000e+00> : vector<8xf32>
    %102 = vector.multi_reduction <add>, %101, %cst_33 [1] : vector<8x4xf32> to vector<8xf32>
    %103 = vector.shape_cast %102 : vector<8xf32> to vector<8x1xf32>
    %104 = vector.broadcast %103 : vector<8x1xf32> to vector<8x4xf32>
    %105 = arith.divf %101, %104 : vector<8x4xf32>
    %false_34 = arith.constant false
    %106 = vector.broadcast %false_34 : i1 to vector<8x4xi1>
    %cst_35 = arith.constant dense<0xFF800000> : vector<8xf32>
    %107 = vector.multi_reduction <maximumf>, %105, %cst_35 [1] : vector<8x4xf32> to vector<8xf32>
    %108 = vector.shape_cast %107 : vector<8xf32> to vector<8x1xf32>
    %109 = vector.broadcast %108 : vector<8x1xf32> to vector<8x4xf32>
    %110 = arith.cmpf oeq, %105, %109 : vector<8x4xf32>
    %c4_i32_36 = arith.constant 4 : i32
    %111 = vector.broadcast %c4_i32_36 : i32 to vector<8x4xi32>
    %112 = arith.select %110, %11, %111 : vector<8x4xi1>, vector<8x4xi32>
    %cst_37 = arith.constant dense<2147483647> : vector<8xi32>
    %113 = vector.multi_reduction <minsi>, %112, %cst_37 [1] : vector<8x4xi32> to vector<8xi32>
    %114 = vector.shape_cast %113 : vector<8xi32> to vector<8x1xi32>
    %115 = vector.broadcast %114 : vector<8x1xi32> to vector<8x4xi32>
    %116 = arith.cmpi eq, %11, %115 : vector<8x4xi32>
    %117 = arith.ori %106, %116 : vector<8x4xi1>
    %cst_38 = arith.constant 0xFF800000 : f32
    %118 = vector.broadcast %cst_38 : f32 to vector<8x4xf32>
    %119 = arith.select %116, %118, %105 : vector<8x4xi1>, vector<8x4xf32>
    %cst_39 = arith.constant dense<0xFF800000> : vector<8xf32>
    %120 = vector.multi_reduction <maximumf>, %119, %cst_39 [1] : vector<8x4xf32> to vector<8xf32>
    %121 = vector.shape_cast %120 : vector<8xf32> to vector<8x1xf32>
    %122 = vector.broadcast %121 : vector<8x1xf32> to vector<8x4xf32>
    %123 = arith.cmpf oeq, %119, %122 : vector<8x4xf32>
    %c4_i32_40 = arith.constant 4 : i32
    %124 = vector.broadcast %c4_i32_40 : i32 to vector<8x4xi32>
    %125 = arith.select %123, %11, %124 : vector<8x4xi1>, vector<8x4xi32>
    %cst_41 = arith.constant dense<2147483647> : vector<8xi32>
    %126 = vector.multi_reduction <minsi>, %125, %cst_41 [1] : vector<8x4xi32> to vector<8xi32>
    %127 = vector.shape_cast %126 : vector<8xi32> to vector<8x1xi32>
    %128 = vector.broadcast %127 : vector<8x1xi32> to vector<8x4xi32>
    %129 = arith.cmpi eq, %11, %128 : vector<8x4xi32>
    %130 = arith.ori %117, %129 : vector<8x4xi1>
    %131 = math.exp %105 : vector<8x4xf32>
    %cst_42 = arith.constant 0.000000e+00 : f32
    %132 = vector.broadcast %cst_42 : f32 to vector<8x4xf32>
    %133 = arith.select %130, %131, %132 : vector<8x4xi1>, vector<8x4xf32>
    %cst_43 = arith.constant dense<0.000000e+00> : vector<8xf32>
    %134 = vector.multi_reduction <add>, %133, %cst_43 [1] : vector<8x4xf32> to vector<8xf32>
    %135 = vector.shape_cast %134 : vector<8xf32> to vector<8x1xf32>
    %136 = vector.broadcast %135 : vector<8x1xf32> to vector<8x4xf32>
    %137 = arith.divf %133, %136 : vector<8x4xf32>
    %138 = vector.extract_strided_slice %10 {offsets = [0, 12], sizes = [8, 4], strides = [1, 1]} : vector<8x16xf32> to vector<8x4xf32>
    %cst_44 = arith.constant dense<0xFF800000> : vector<8xf32>
    %139 = vector.multi_reduction <maximumf>, %138, %cst_44 [1] : vector<8x4xf32> to vector<8xf32>
    %140 = vector.shape_cast %139 : vector<8xf32> to vector<8x1xf32>
    %141 = vector.broadcast %140 : vector<8x1xf32> to vector<8x4xf32>
    %142 = arith.subf %138, %141 : vector<8x4xf32>
    %143 = math.exp %142 : vector<8x4xf32>
    %cst_45 = arith.constant dense<0.000000e+00> : vector<8xf32>
    %144 = vector.multi_reduction <add>, %143, %cst_45 [1] : vector<8x4xf32> to vector<8xf32>
    %145 = vector.shape_cast %144 : vector<8xf32> to vector<8x1xf32>
    %146 = vector.broadcast %145 : vector<8x1xf32> to vector<8x4xf32>
    %147 = arith.divf %143, %146 : vector<8x4xf32>
    %false_46 = arith.constant false
    %148 = vector.broadcast %false_46 : i1 to vector<8x4xi1>
    %cst_47 = arith.constant dense<0xFF800000> : vector<8xf32>
    %149 = vector.multi_reduction <maximumf>, %147, %cst_47 [1] : vector<8x4xf32> to vector<8xf32>
    %150 = vector.shape_cast %149 : vector<8xf32> to vector<8x1xf32>
    %151 = vector.broadcast %150 : vector<8x1xf32> to vector<8x4xf32>
    %152 = arith.cmpf oeq, %147, %151 : vector<8x4xf32>
    %c4_i32_48 = arith.constant 4 : i32
    %153 = vector.broadcast %c4_i32_48 : i32 to vector<8x4xi32>
    %154 = arith.select %152, %11, %153 : vector<8x4xi1>, vector<8x4xi32>
    %cst_49 = arith.constant dense<2147483647> : vector<8xi32>
    %155 = vector.multi_reduction <minsi>, %154, %cst_49 [1] : vector<8x4xi32> to vector<8xi32>
    %156 = vector.shape_cast %155 : vector<8xi32> to vector<8x1xi32>
    %157 = vector.broadcast %156 : vector<8x1xi32> to vector<8x4xi32>
    %158 = arith.cmpi eq, %11, %157 : vector<8x4xi32>
    %159 = arith.ori %148, %158 : vector<8x4xi1>
    %cst_50 = arith.constant 0xFF800000 : f32
    %160 = vector.broadcast %cst_50 : f32 to vector<8x4xf32>
    %161 = arith.select %158, %160, %147 : vector<8x4xi1>, vector<8x4xf32>
    %cst_51 = arith.constant dense<0xFF800000> : vector<8xf32>
    %162 = vector.multi_reduction <maximumf>, %161, %cst_51 [1] : vector<8x4xf32> to vector<8xf32>
    %163 = vector.shape_cast %162 : vector<8xf32> to vector<8x1xf32>
    %164 = vector.broadcast %163 : vector<8x1xf32> to vector<8x4xf32>
    %165 = arith.cmpf oeq, %161, %164 : vector<8x4xf32>
    %c4_i32_52 = arith.constant 4 : i32
    %166 = vector.broadcast %c4_i32_52 : i32 to vector<8x4xi32>
    %167 = arith.select %165, %11, %166 : vector<8x4xi1>, vector<8x4xi32>
    %cst_53 = arith.constant dense<2147483647> : vector<8xi32>
    %168 = vector.multi_reduction <minsi>, %167, %cst_53 [1] : vector<8x4xi32> to vector<8xi32>
    %169 = vector.shape_cast %168 : vector<8xi32> to vector<8x1xi32>
    %170 = vector.broadcast %169 : vector<8x1xi32> to vector<8x4xi32>
    %171 = arith.cmpi eq, %11, %170 : vector<8x4xi32>
    %172 = arith.ori %159, %171 : vector<8x4xi1>
    %173 = math.exp %147 : vector<8x4xf32>
    %cst_54 = arith.constant 0.000000e+00 : f32
    %174 = vector.broadcast %cst_54 : f32 to vector<8x4xf32>
    %175 = arith.select %172, %173, %174 : vector<8x4xi1>, vector<8x4xf32>
    %cst_55 = arith.constant dense<0.000000e+00> : vector<8xf32>
    %176 = vector.multi_reduction <add>, %175, %cst_55 [1] : vector<8x4xf32> to vector<8xf32>
    %177 = vector.shape_cast %176 : vector<8xf32> to vector<8x1xf32>
    %178 = vector.broadcast %177 : vector<8x1xf32> to vector<8x4xf32>
    %179 = arith.divf %175, %178 : vector<8x4xf32>
    %180 = tpu.concatenate %53, %95, %137, %179 in 1 : vector<8x4xf32>, vector<8x4xf32>, vector<8x4xf32>, vector<8x4xf32> -> vector<8x16xf32>
    %c0_56 = arith.constant 0 : index
    %c0_57 = arith.constant 0 : index
    %181 = vector.load %arg6[%c0_56, %c0_57] : memref<32x128xf32, #tpu.memory_space<vmem>>, vector<32x128xf32>
    %cst_58 = arith.constant dense<0.000000e+00> : vector<8x128xf32>
    %182 = tpu.matmul %5, %181, %cst_58 {dimension_numbers = #tpu.dot_dimension_numbers<[1], [0], [0], [1], [0, 0, 1, 1], [], []>} : vector<8x32xf32>, vector<32x128xf32>, vector<8x128xf32> -> vector<8x128xf32>
    %c0_59 = arith.constant 0 : index
    %c0_60 = arith.constant 0 : index
    %183 = vector.load %arg7[%c0_59, %c0_60] : memref<1x128xf32, #tpu.memory_space<vmem>>, vector<1x128xf32>
    %184 = vector.broadcast %183 : vector<1x128xf32> to vector<8x128xf32>
    %185 = arith.addf %182, %184 : vector<8x128xf32>
    %c0_61 = arith.constant 0 : index
    %c0_62 = arith.constant 0 : index
    %186 = vector.load %arg8[%c0_61, %c0_62] : memref<16x128xf32, #tpu.memory_space<vmem>>, vector<16x128xf32>
    %cst_63 = arith.constant dense<0.000000e+00> : vector<8x128xf32>
    %187 = tpu.matmul %180, %186, %cst_63 {dimension_numbers = #tpu.dot_dimension_numbers<[1], [0], [0], [1], [0, 0, 1, 1], [], []>} : vector<8x16xf32>, vector<16x128xf32>, vector<8x128xf32> -> vector<8x128xf32>
    %188 = arith.mulf %187, %185 : vector<8x128xf32>
    %cst_64 = arith.constant 0.000000e+00 : f32
    %189 = vector.broadcast %cst_64 : f32 to vector<8x32xf32>
    %190 = vector.extract_strided_slice %188 {offsets = [0, 0], sizes = [8, 32], strides = [1, 1]} : vector<8x128xf32> to vector<8x32xf32>
    %191 = arith.addf %189, %190 : vector<8x32xf32>
    %192 = vector.extract_strided_slice %188 {offsets = [0, 32], sizes = [8, 32], strides = [1, 1]} : vector<8x128xf32> to vector<8x32xf32>
    %193 = arith.addf %191, %192 : vector<8x32xf32>
    %194 = vector.extract_strided_slice %188 {offsets = [0, 64], sizes = [8, 32], strides = [1, 1]} : vector<8x128xf32> to vector<8x32xf32>
    %195 = arith.addf %193, %194 : vector<8x32xf32>
    %196 = vector.extract_strided_slice %188 {offsets = [0, 96], sizes = [8, 32], strides = [1, 1]} : vector<8x128xf32> to vector<8x32xf32>
    %197 = arith.addf %195, %196 : vector<8x32xf32>
    %198 = arith.addf %5, %197 : vector<8x32xf32>
    %c0_65 = arith.constant 0 : index
    %c0_66 = arith.constant 0 : index
    %199 = vector.load %arg9[%c0_65, %c0_66] : memref<32x256xf32, #tpu.memory_space<vmem>>, vector<32x256xf32>
    %cst_67 = arith.constant dense<0.000000e+00> : vector<8x256xf32>
    %200 = tpu.matmul %198, %199, %cst_67 {dimension_numbers = #tpu.dot_dimension_numbers<[1], [0], [0], [1], [0, 0, 1, 1], [], []>} : vector<8x32xf32>, vector<32x256xf32>, vector<8x256xf32> -> vector<8x256xf32>
    %c0_68 = arith.constant 0 : index
    %c0_69 = arith.constant 0 : index
    %201 = vector.load %arg10[%c0_68, %c0_69] : memref<1x256xf32, #tpu.memory_space<vmem>>, vector<1x256xf32>
    %202 = vector.broadcast %201 : vector<1x256xf32> to vector<8x256xf32>
    %203 = arith.addf %200, %202 : vector<8x256xf32>
    %c0_70 = arith.constant 0 : index
    %c0_71 = arith.constant 0 : index
    %204 = vector.load %arg11[%c0_70, %c0_71] : memref<8x256xf32, #tpu.memory_space<vmem>>, vector<8x256xf32>
    tpu.vector_store %arg11[%c0_70, %c0_71], %203 {strides = array<i32>} : memref<8x256xf32, #tpu.memory_space<vmem>>, vector<8x256xf32>,
    return
  }
  func.func @transform_0(%arg0: i32) -> (i32, i32) {
    %c0_i32 = arith.constant 0 : i32
    %c0_i32_0 = arith.constant 0 : i32
    return %arg0, %c0_i32 : i32, i32
  }
  func.func @transform_1(%arg0: i32) -> (i32, i32) {
    %c0_i32 = arith.constant 0 : i32
    %c0_i32_0 = arith.constant 0 : i32
    %c0_i32_1 = arith.constant 0 : i32
    return %c0_i32, %c0_i32_0 : i32, i32
  }
  func.func @transform_2(%arg0: i32) -> (i32, i32) {
    %c0_i32 = arith.constant 0 : i32
    %c0_i32_0 = arith.constant 0 : i32
    %c0_i32_1 = arith.constant 0 : i32
    return %c0_i32, %c0_i32_0 : i32, i32
  }
  func.func @transform_3(%arg0: i32) -> (i32, i32) {
    %c0_i32 = arith.constant 0 : i32
    %c0_i32_0 = arith.constant 0 : i32
    %c0_i32_1 = arith.constant 0 : i32
    return %c0_i32, %c0_i32_0 : i32, i32
  }
  func.func @transform_4(%arg0: i32) -> (i32, i32) {
    %c0_i32 = arith.constant 0 : i32
    %c0_i32_0 = arith.constant 0 : i32
    %c0_i32_1 = arith.constant 0 : i32
    return %c0_i32, %c0_i32_0 : i32, i32
  }
  func.func @transform_5(%arg0: i32) -> (i32, i32) {
    %c0_i32 = arith.constant 0 : i32
    %c0_i32_0 = arith.constant 0 : i32
    %c0_i32_1 = arith.constant 0 : i32
    return %c0_i32, %c0_i32_0 : i32, i32
  }
  func.func @transform_6(%arg0: i32) -> (i32, i32) {
    %c0_i32 = arith.constant 0 : i32
    %c0_i32_0 = arith.constant 0 : i32
    %c0_i32_1 = arith.constant 0 : i32
    return %c0_i32, %c0_i32_0 : i32, i32
  }
  func.func @transform_7(%arg0: i32) -> (i32, i32) {
    %c0_i32 = arith.constant 0 : i32
    %c0_i32_0 = arith.constant 0 : i32
    %c0_i32_1 = arith.constant 0 : i32
    return %c0_i32, %c0_i32_0 : i32, i32
  }
  func.func @transform_8(%arg0: i32) -> (i32, i32) {
    %c0_i32 = arith.constant 0 : i32
    %c0_i32_0 = arith.constant 0 : i32
    %c0_i32_1 = arith.constant 0 : i32
    return %c0_i32, %c0_i32_0 : i32, i32
  }
  func.func @transform_9(%arg0: i32) -> (i32, i32) {
    %c0_i32 = arith.constant 0 : i32
    %c0_i32_0 = arith.constant 0 : i32
    %c0_i32_1 = arith.constant 0 : i32
    return %c0_i32, %c0_i32_0 : i32, i32
  }
  func.func @transform_10(%arg0: i32) -> (i32, i32) {
    %c0_i32 = arith.constant 0 : i32
    %c0_i32_0 = arith.constant 0 : i32
    return %arg0, %c0_i32 : i32, i32
  }
}

</mosaic_0001>

<bundles_post_ra>
// kernel: tpu_custom_call.1
= control target key start
LH: loop header
LB: loop body
LE: loop exit
PB: predicated region body
PF: predicated region fallthrough
CT: control target
= control target key end

     0   :  { %s1898_s0 = inlined_call_operand.vmem [shape: f32[16,32], index: 0, kind: input, shape index: {}]   ;;  %s1899_s1 = inlined_call_operand.vmem [shape: f32[32,32], index: 1, kind: input, shape index: {}]   ;;  %s1900_s2 = inlined_call_operand.hbm [shape: f32[1,32], index: 2, kind: input, shape index: {}]   ;;  %s1901_s3 = inlined_call_operand.vmem [shape: f32[32,16], index: 3, kind: input, shape index: {}]   ;;  %s1902_s4 = inlined_call_operand.vmem [shape: f32[1,16], index: 4, kind: input, shape index: {}]   ;;  %s1903_s5 = inlined_call_operand.hbm [shape: f32[32,128], index: 5, kind: input, shape index: {}]   ;;  %s1904_s6 = inlined_call_operand.vmem [shape: f32[1,128], index: 6, kind: input, shape index: {}]   ;;  %s1905_s7 = inlined_call_operand.hbm [shape: f32[16,128], index: 7, kind: input, shape index: {}]   ;;  %s1906_s8 = inlined_call_operand.hbm [shape: f32[32,256], index: 8, kind: input, shape index: {}]   ;;  %s1907_s9 = inlined_call_operand.vmem [shape: f32[1,256], index: 9, kind: input, shape index: {}]   ;;  %s1908_s10 = inlined_call_operand.hbm [shape: f32[16,256], index: 10, kind: output, shape index: {}]  }
   0x1   :  { %1913 = sst [smem:[#allocation19_spill]] %s1900_s2 }
   0x2   :  { %1914 = sst [smem:[#allocation20_spill]] %s1903_s5 }
   0x3   :  { %15 = vsyncpa [#allocation3], 0 }
   0x4   :  { %16 = vsyncpa [#allocation6], 0 }
   0x5   :  { %17 = vsyncpa [#allocation9], 0 }
   0x6   :  { %18 = vsyncpa [#allocation4], 0 }
   0x7   :  { %20 = vsyncpa [#allocation4 + $0x1], 0  ;;  %s1573_s13 = smov 0   ;;  %s1575_s14 = smov 0  }
   0x8   :  { %s1577_s15 = smov 0   ;;  %s1579_s16 = smov 0  }
   0x9 LB: > { %1915 = sst [smem:[#allocation15_spill]] %s1495_s15  ;;  %s1594_s17 = sadd.s32 4294967295, %s1499_s16   ;;  %s1499_s16 = sphi %s1579_s16, %s1926_s16   ;;  %s1495_s15 = sphi %s1577_s15, %s1928_s15   ;;  %s1491_s14 = sphi %s1575_s14, %s1930_s14   ;;  %s1487_s13 = sphi %s1573_s13, %s1929_s13  }
   0xa   : > { %s1151_s18 = sadd.s32 4294967294, %s1499_s16   ;;  %s1598_s19 = sadd.s32 1, %s1499_s16  }
   0xb   : > { %1916 = sst [smem:[#allocation16_spill]] %s1598_s19  ;;  %s248_s20 = sadd.s32 1, %s1495_s15 }
   0xc   : > { %s245_s21 = ssub.s32 %s1499_s16, %s1598_s19  ;;  %p258_p0 = scmp.ne.s32.totalorder %s1495_s15, %s1491_s14 }
   0xd   : > { %p246_p1 = scmp.eq.s32.totalorder %s245_s21, 0  ;;  %p259_p2 = scmp.eq.s32.totalorder %s1594_s17, 1 }
   0xe   : > { %p264_p3 = scmp.ne.s32.totalorder %s1491_s14, %s1487_s13  ;;  %p265_p4 = scmp.eq.s32.totalorder %s1151_s18, 1 }
   0xf   : > { %s1609_s22 = scalar_select %p246_p1, %s1495_s15, %s248_s20  }
  0x10   : > { %p1611_p5 = por %p259_p2, %p258_p0  ;;  %p1615_p6 = por %p265_p4, %p264_p3 }
  0x11   : > { %1917 = sst [smem:[#allocation17_spill]] %s1609_s22  ;;  %p1152_p7 = scmp.ge.s32.totalorder %s1499_s16, 1 }
  0x12   : > { %s1919_s24 = scalar_select %p1615_p6, 1, 0 }
  0x13   : > { %p272_p8 = scmp.lt.s32.totalorder %s1499_s16, 3  ;;  %p1212_p9 = scmp.eq.s32.totalorder %s1594_s17, 0 }
  0x14   : > { %1920 = sst [smem:[#allocation18_spill]] %s1919_s24  ;;  %s1501_s29 = smov [#allocation5]  }
  0x15   : > { %p1622_p10 = pnand %p1152_p7, %p272_p8  ;;  %s1922_s5 = sld [smem:[#allocation20_spill]] }
  0x16   : > { %s306_s30 = sshll.u32 %s1501_s29, 4  ;;  %s1924_s2 = sld [smem:[#allocation19_spill]]  ;;  %s307_s30 = int_to_ptr.vmem [resolvable:$true] %s306_s30 }
  0x17   : > { %p1195_p11 = pneg %p1622_p10  ;;  %s1502_s21 = smov 128  }
  0x18   : > { %s1503_s26 = smov 8   ;;  %s1504_s27 = smov [#allocation2]  }
  0x19   : > { %p1633_p12 = pnand %p1212_p9, %p1195_p11  ;;  %s289_s29 = sshll.u32 %s1504_s27, 4  ;;  %s290_s29 = int_to_ptr.vmem [resolvable:$true] %s289_s29 }
  0x1a   : > { %s321_s15 = sshll.u32 %s1905_s7, 4  ;;  %s1505_s19 = smov [#allocation7]   ;;  %s322_s15 = int_to_ptr.hbm [resolvable:$true] %s321_s15 }
  0x1b   : > { %s304_s28 = sshll.u32 %s1922_s5, 4  ;;  %s323_s24 = sshll.u32 %s1505_s19, 4  ;;  %s305_s28 = int_to_ptr.hbm [resolvable:$true] %s304_s28  ;;  %s324_s24 = int_to_ptr.vmem [resolvable:$true] %s323_s24 }
  0x1c   : > { %s287_s20 = sshll.u32 %s1924_s2, 4  ;;  %s335_s2 = sshll.u32 %s1906_s8, 4  ;;  %s288_s20 = int_to_ptr.hbm [resolvable:$true] %s287_s20  ;;  %s336_s2 = int_to_ptr.hbm [resolvable:$true] %s335_s2 }
  0x1d   : > { %1201 = dma.hbm_to_vmem [thread:$0]  (!%p1633_p12), %s305_s28, 512, %s307_s30, [#allocation6], %s1502_s21, %s1502_s21, %s1503_s26  }
  0x1e   : > { %1198 = dma.hbm_to_vmem [thread:$0]  (!%p1633_p12), %s288_s20, 16, %s290_s29, [#allocation3]  }
  0x1f   : > { %1204 = dma.hbm_to_vmem [thread:$0]  (!%p1633_p12), %s322_s15, 256, %s324_s24, [#allocation6], %s1502_s21, %s1502_s21, %s1503_s26  }
  0x20   : > { %s1506_s28 = smov [#allocation8]   ;;  %s1507_s5 = smov 256  }
  0x21   : > { %s337_s30 = sshll.u32 %s1506_s28, 4  ;;  %s1508_s22 = smov 16   ;;  %s338_s30 = int_to_ptr.vmem [resolvable:$true] %s337_s30 }
  0x22   : > { %1207 = dma.hbm_to_vmem [thread:$0]  (!%p1633_p12), %s336_s2, 1024, %s338_s30, [#allocation9], %s1507_s5, %s1507_s5, %s1508_s22  }
  0x23   : > { %363 = sbr.rel (%p1622_p10) target bundleno = 2144 (0x860), region = 60 }
  0x28   : > { %1470 = dma.done.wait (%p1212_p9), [#allocation3], 16  }
  0x29   : > { %1472 = vsyncadd (%p1212_p9), [#allocation3], 4294967280 }
  0x2a   : > { %1474 = dma.done.wait (%p1212_p9), [#allocation6], 768  }
  0x2b   : > { %1476 = vsyncadd (%p1212_p9), [#allocation6], 4294966528 }
  0x2c   : > { %1478 = dma.done.wait (%p1212_p9), [#allocation9], 1024  }
  0x2d   : > { %1480 = vsyncadd (%p1212_p9), [#allocation9], 4294966272  ;;  %p416_p13 = scmp.lt.s32.totalorder %s1594_s17, 1  ;;  %v424_v0 = vld [vmem:[%s1899_s1 + $0x18] sm:$0xff]  ;;  %v423_v1 = vld [vmem:[%s1899_s1 + $0x10] sm:$0xff]  ;;  %vm429_vm0 = vcmask 261120   ;;  %v484_v46 = vlaneseq }
  0x2e   : > { %445 = vmatpush.msra.mxu0 %v424_v0  ;;  %v422_v2 = vld [vmem:[%s1899_s1 + $0x8] sm:$0xff]  ;;  %v456_v3 = vld [vmem:[%s1901_s3 + $0x18] sm:$0xff]  ;;  %v455_v5 = vld [vmem:[%s1901_s3 + $0x10] sm:$0xff]  ;;  %vm784_vm1 = vcmask 130144   ;;  %vm576_vm2 = vcmask 64544   ;;  %vm680_vm3 = vcmask 97344  }
  0x2f   : > { %s417_s2 = scalar_select %p416_p13, %s1594_s17, 1  ;;  %476 = vmatpush.msra.mxu1 %v456_v3  ;;  %v908_v4 = vld [vmem:[#allocation5 + $0x18] sm:$0xff]  ;;  %v907_v6 = vld [vmem:[#allocation5 + $0x10] sm:$0xff]  ;;  %v454_v9 = vld [vmem:[%s1901_s3 + $0x8] sm:$0xff]  ;;  %vm486_vm4 = vcmask 31744   ;;  %v1727_v47 = vand.u32 127, %v484_v46 }
  0x30   : > { %446 = vmatpush.msra.mxu0 %v423_v1  ;;  %925 = vmatpush.msra.mxu2 %v908_v4  ;;  %v421_v7 = vld [vmem:[%s1899_s1] sm:$0xff]  ;;  %v906_v10 = vld [vmem:[#allocation5 + $0x8] sm:$0xff]  ;;  %s1509_s20 = smov 124   ;;  %s1510_s21 = smov 120  }
  0x31   : > { %s1164_s15 = sshll.u32 %s417_s2, 3  ;;  %477 = vmatpush.msra.mxu1 %v455_v5  ;;  %v453_v11 = vld [vmem:[%s1901_s3] sm:$0xff]  ;;  %s1511_s26 = smov 116  }
  0x32   : > { %s419_s18 = scalar_lea.vmem %s1898_s0, %s1164_s15  ;;  %447 = vmatpush.msra.mxu0 %v422_v2  ;;  %926 = vmatpush.msra.mxu2 %v907_v6  ;;  %v905_v12 = vld [vmem:[#allocation5] sm:$0xff]  ;;  %v1270_v13 = vld [vmem:[#allocation2] ss:$0 sm:$0xff]  ;;  %s1512_s27 = smov 12  }
  0x33   : > { %v420_v8 = vld [vmem:[%s419_s18] sm:$0xff]  ;;  %478 = vmatpush.msra.mxu1 %v454_v9  ;;  %s1513_s29 = smov 8   ;;  %s1514_s12 = smov 4  }
  0x34   : > { %448 = vmatpush.msra.mxu0 %v421_v7  ;;  %927 = vmatpush.msra.mxu2 %v906_v10  ;;  %v1271_v16 = vld [vmem:[%s1902_s4] ss:$0 sm:$0xff]  ;;  %s1515_s30 = smov 32   ;;  %s1516_s5 = smov 64  }
  0x35   : > { %1165 = vmatmul.msk.f32.vlgmr.msra.gmra.mxu0 %vm429_vm0, %v420_v8  ;;  %479 = vmatpush.msra.mxu1 %v453_v11  ;;  %s1517_s22 = smov 96   ;;  %s413_s2 = sand.u32 1, %s1491_s14  }
  0x36   : > { %928 = vmatpush.msra.mxu2 %v905_v12  ;;  %s1163_s24 = sshll.u32 %s413_s2, 4  ;;  %s1176_s25 = sshll.u32 %s1594_s17, 4 }
  0xb2   : > { %v450_v14 = vpop.f32.mrf.mxu0 }
  0xb3   : > { %v1698_v15 = vadd.f32 %v1270_v13, %v450_v14 }
  0xb5   : > { %1166 = vmatmul.msk.f32.vlgmr.msra.gmra.mxu1 %vm429_vm0, %v1698_v15  ;;  %1167 = vmatmul.msk.f32.vlgmr.msra.gmra.mxu2 %vm429_vm0, %v1698_v15 }
 0x132   : > { %v481_v17 = vpop.f32.mrf.mxu1 }
 0x133   : > { %v482_v18 = vadd.f32 %v1271_v16, %v481_v17 }
 0x135   : > { %v785_v19 = vsel %vm784_vm1, %v482_v18, -inf  ;;  %v577_v20 = vsel %vm576_vm2, %v482_v18, -inf  ;;  %v681_v21 = vsel %vm680_vm3, %v482_v18, -inf  ;;  %v487_v22 = vsel %vm486_vm4, %v482_v18, -inf }
 0x136   : > { %786 = vmax.xlane.f32.xlu1 %v785_v19  ;;  %578 = vmax.xlane.f32.xlu0 %v577_v20 }
 0x13e   : > { %682 = vmax.xlane.f32.xlu0 %v681_v21 }
 0x146   : > { %488 = vmax.xlane.f32.xlu0 %v487_v22 }
 0x1a9   : > { %v579_v23 = vpop.xlane.xlu0 %578  ;;  %v787_v28 = vpop.xlane.xlu1 %786 }
 0x1aa   : > { %v580_v24 = vsub.f32 %v482_v18, %v579_v23  ;;  %v788_v31 = vsub.f32 %v482_v18, %v787_v28 }
 0x1ac   : > { %v581_v25 = vmul.f32 1.442695, %v580_v24  ;;  %v789_v32 = vmul.f32 1.442695, %v788_v31 }
 0x1ae   : > { %1273 = vpow2.f32 %v581_v25 }
 0x1b1   : > { %v683_v26 = vpop.xlane.xlu0 %682 }
 0x1b2   : > { %v684_v27 = vsub.f32 %v482_v18, %v683_v26 }
 0x1b4   : > { %v685_v29 = vmul.f32 1.442695, %v684_v27  ;;  %v1711_v30 = vpop.eup %1273 }
 0x1b5   : > { %584 = vrot.lane.b32.xlu1 %v1711_v30, %s1509_s20 }
 0x1b6   : > { %1275 = vpow2.f32 %v685_v29 }
 0x1b7   : > { %1277 = vpow2.f32 %v789_v32 }
 0x1b9   : > { %v489_v35 = vpop.xlane.xlu0 %488 }
 0x1ba   : > { %v490_v36 = vsub.f32 %v482_v18, %v489_v35 }
 0x1bc   : > { %v1715_v33 = vpop.eup %1275  ;;  %v491_v37 = vmul.f32 1.442695, %v490_v36 }
 0x1bd   : > { %688 = vrot.lane.b32.xlu2 %v1715_v33, %s1510_s21  ;;  %v1278_v34 = vpop.eup %1277 }
 0x1be   : > { %1279 = vpow2.f32 %v491_v37 }
 0x1c4   : > { %v1720_v38 = vpop.eup %1279 }
 0x1c5   : > { %792 = vrot.lane.b32.xlu2 %v1278_v34, %s1511_s26  ;;  %v493_v39 = vsel %vm486_vm4, %v1720_v38, 0.0 }
 0x1df   : > { %494 = vadd.xlane.f32.xlu1 %v493_v39 }
 0x1f8   : > { %817 = vrot.lane.b32.xlu1 %v1727_v47, %s1512_s27 }
 0x217   : > { %v689_v40 = vpop.permute.xlu2 %688 }
 0x218   : > { %v691_v41 = vsel %vm486_vm4, %v689_v40, 0.0 }
 0x219   : > { %692 = vadd.xlane.f32.xlu0 %v691_v41 }
 0x21f   : > { %v793_v42 = vpop.permute.xlu2 %792 }
 0x220   : > { %v795_v43 = vsel %vm486_vm4, %v793_v42, 0.0 }
 0x221   : > { %796 = vadd.xlane.f32.xlu0 %v795_v43 }
 0x227   : > { %v585_v44 = vpop.permute.xlu1 %584 }
 0x228   : > { %v587_v45 = vsel %vm486_vm4, %v585_v44, 0.0 }
 0x229   : > { %588 = vadd.xlane.f32.xlu2 %v587_v45 }
 0x252   : > { %v495_v24 = vpop.xlane.xlu1 %494 }
 0x253   : > { %v505_v31 = vand.u32 2147483647, %v495_v24 }
 0x28c   : > { %v693_v48 = vpop.xlane.xlu0 %692 }
 0x28d   : > { %v705_v11 = vand.u32 2147483648, %v693_v48  ;;  %vm699_vm13 = vweird.f32 %v693_v48  ;;  %v703_v13 = vand.u32 2147483647, %v693_v48 }
 0x28f   : > { %v706_v19 = vor.u32 1.1754944e-38, %v705_v11 }
 0x294   : > { %v797_v49 = vpop.xlane.xlu0 %796 }
 0x295   : > { %1281 = vrcp.f32 %v797_v49  ;;  %v809_v56 = vand.u32 2147483648, %v797_v49  ;;  %v807_v58 = vand.u32 2147483647, %v797_v49  ;;  %vm803_vm6 = vweird.f32 %v797_v49 }
 0x296   : > { %1283 = vrcp.f32 %v693_v48 }
 0x297   : > { %v810_v61 = vor.u32 1.1754944e-38, %v809_v56  ;;  %vm808_vm8 = vcmp.eq.f32.partialorder %v807_v58, 8.507059e+37 }
 0x29b   : > { %v1282_v50 = vpop.eup %1281 }
 0x29c   : > { %v1284_v51 = vpop.eup %1283  ;;  %v799_v52 = vmul.f32 %v1282_v50, %v797_v49  ;;  %v589_v53 = vpop.xlane.xlu2 %588  ;;  %vm804_vm5 = vweird.f32 %v1282_v50 }
 0x29d   : > { %1285 = vrcp.f32 %v589_v53  ;;  %v695_v55 = vmul.f32 %v1284_v51, %v693_v48  ;;  %vm805_vm7 = vmor %vm803_vm6, %vm804_vm5  ;;  %v601_v5 = vand.u32 2147483648, %v589_v53  ;;  %v599_v8 = vand.u32 2147483647, %v589_v53 }
 0x29e   : > { %v800_v54 = vsub.f32 1.0, %v799_v52  ;;  %vm700_vm10 = vweird.f32 %v1284_v51  ;;  %vm595_vm11 = vweird.f32 %v589_v53  ;;  %vm704_vm5 = vcmp.eq.f32.partialorder %v703_v13, 8.507059e+37  ;;  %v818_v52 = vpop.permute.xlu1 %817 }
 0x29f   : > { %v696_v60 = vsub.f32 1.0, %v695_v55  ;;  %v602_v12 = vor.u32 1.1754944e-38, %v601_v5  ;;  %vm600_vm14 = vcmp.eq.f32.partialorder %v599_v8, 8.507059e+37  ;;  %vm701_vm15 = vmor %vm699_vm13, %vm700_vm10  ;;  %1287 = vrcp.f32 %v495_v24 }
 0x2a0   : > { %v801_v57 = vmul.f32 %v1282_v50, %v800_v54 }
 0x2a1   : > { %v697_v3 = vmul.f32 %v1284_v51, %v696_v60 }
 0x2a2   : > { %v802_v59 = vadd.f32 %v1282_v50, %v801_v57 }
 0x2a3   : > { %v1286_v62 = vpop.eup %1285  ;;  %v698_v9 = vadd.f32 %v1284_v51, %v697_v3 }
 0x2a4   : > { %v806_v63 = vsel %vm805_vm7, %v1282_v50, %v802_v59  ;;  %v591_v0 = vmul.f32 %v1286_v62, %v589_v53  ;;  %vm596_vm9 = vweird.f32 %v1286_v62  ;;  %vm501_vm7 = vweird.f32 %v495_v24 }
 0x2a5   : > { %v811_v1 = vsel %vm808_vm8, %v810_v61, %v806_v63  ;;  %vm597_vm12 = vmor %vm595_vm11, %vm596_vm9  ;;  %v702_v18 = vsel %vm701_vm15, %v1284_v51, %v698_v9  ;;  %v1288_v25 = vpop.eup %1287  ;;  %vm506_vm9 = vcmp.eq.f32.partialorder %v505_v31, 8.507059e+37 }
 0x2a6   : > { %v1731_v2 = vmul.f32 %v1278_v34, %v811_v1  ;;  %v592_v4 = vsub.f32 1.0, %v591_v0  ;;  %v707_v21 = vsel %vm704_vm5, %v706_v19, %v702_v18  ;;  %v497_v26 = vmul.f32 %v1288_v25, %v495_v24 }
 0x2a7   : > { %v1741_v22 = vmul.f32 %v1715_v33, %v707_v21  ;;  %vm502_vm6 = vweird.f32 %v1288_v25 }
 0x2a8   : > { %v813_v6 = vsel %vm784_vm1, %v1731_v2, -inf  ;;  %v593_v7 = vmul.f32 %v1286_v62, %v592_v4  ;;  %v498_v27 = vsub.f32 1.0, %v497_v26  ;;  %vm503_vm8 = vmor %vm501_vm7, %vm502_vm6 }
 0x2a9   : > { %814 = vmax.xlane.f32.xlu2 %v813_v6  ;;  %v709_v23 = vsel %vm680_vm3, %v1741_v22, -inf }
 0x2aa   : > { %v594_v10 = vadd.f32 %v1286_v62, %v593_v7  ;;  %v499_v28 = vmul.f32 %v1288_v25, %v498_v27 }
 0x2ac   : > { %v598_v14 = vsel %vm597_vm12, %v1286_v62, %v594_v10  ;;  %v500_v29 = vadd.f32 %v1288_v25, %v499_v28 }
 0x2ad   : > { %v603_v16 = vsel %vm600_vm14, %v602_v12, %v598_v14 }
 0x2ae   : > { %v1736_v17 = vmul.f32 %v1711_v30, %v603_v16  ;;  %v507_v30 = vand.u32 2147483648, %v495_v24  ;;  %v504_v32 = vsel %vm503_vm8, %v1288_v25, %v500_v29 }
 0x2b0   : > { %v605_v20 = vsel %vm576_vm2, %v1736_v17, -inf  ;;  %v508_v33 = vor.u32 1.1754944e-38, %v507_v30 }
 0x2b1   : > { %606 = vmax.xlane.f32.xlu0 %v605_v20 }
 0x2b2   : > { %v509_v34 = vsel %vm506_vm9, %v508_v33, %v504_v32 }
 0x2b3   : > { %v1750_v35 = vmul.f32 %v1720_v38, %v509_v34 }
 0x2b5   : > { %v511_v36 = vsel %vm486_vm4, %v1750_v35, -inf }
 0x2b9   : > { %710 = vmax.xlane.f32.xlu0 %v709_v23 }
 0x2c1   : > { %713 = vrot.lane.b32.xlu2 %v1727_v47, %s1513_s29 }
 0x2cd   : > { %609 = vrot.lane.b32.xlu0 %v1727_v47, %s1514_s12 }
 0x2f7   : > { %512 = vmax.xlane.f32.xlu0 %v511_v36 }
 0x31c   : > { %v815_v37 = vpop.xlane.xlu2 %814 }
 0x31d   : > { %vm816_vm12 = vcmp.eq.f32.partialorder %v1731_v2, %v815_v37 }
 0x31e   : > { %v819_v55 = vsel %vm816_vm12, %v818_v52, 4 }
 0x31f   : > { %v820_v58 = vsel %vm784_vm1, %v819_v55, 2147483647 }
 0x320   : > { %v822_v59 = vshra.s32 %v820_v58, 16  ;;  %v821_v10 = vand.u32 65535, %v820_v58 }
 0x322   : > { %v824_v60 = vcvt.s32.f32 %v822_v59  ;;  %v823_v12 = vcvt.s32.f32 %v821_v10 }
 0x324   : > { %v607_v39 = vpop.xlane.xlu0 %606  ;;  %v714_v40 = vpop.permute.xlu2 %713 }
 0x325   : > { %vm608_vm11 = vcmp.eq.f32.partialorder %v1736_v17, %v607_v39 }
 0x32c   : > { %v711_v41 = vpop.xlane.xlu0 %710 }
 0x32d   : > { %vm712_vm10 = vcmp.eq.f32.partialorder %v1741_v22, %v711_v41 }
 0x32e   : > { %v715_v42 = vsel %vm712_vm10, %v714_v40, 4 }
 0x32f   : > { %v716_v43 = vsel %vm680_vm3, %v715_v42, 2147483647 }
 0x330   : > { %v718_v44 = vshra.s32 %v716_v43, 16  ;;  %v717_v61 = vand.u32 65535, %v716_v43 }
 0x332   : > { %v720_v45 = vcvt.s32.f32 %v718_v44  ;;  %v719_v63 = vcvt.s32.f32 %v717_v61 }
 0x334   : > { %721 = vmin.xlane.f32.xlu1 %v720_v45 }
 0x33f   : > { %v610_v38 = vpop.permute.xlu0 %609 }
 0x340   : > { %v611_v46 = vsel %vm608_vm11, %v610_v38, 4 }
 0x341   : > { %v612_v48 = vsel %vm576_vm2, %v611_v46, 2147483647 }
 0x342   : > { %v614_v49 = vshra.s32 %v612_v48, 16  ;;  %v613_v1 = vand.u32 65535, %v612_v48 }
 0x344   : > { %v616_v50 = vcvt.s32.f32 %v614_v49  ;;  %v615_v4 = vcvt.s32.f32 %v613_v1 }
 0x346   : > { %617 = vmin.xlane.f32.xlu2 %v616_v50 }
 0x34d   : > { %733 = vrot.lane.b32.xlu1 %v1741_v22, %s1510_s21 }
 0x36a   : > { %v513_v51 = vpop.xlane.xlu0 %512 }
 0x36b   : > { %vm514_vm3 = vcmp.eq.f32.partialorder %v1750_v35, %v513_v51 }
 0x36c   : > { %v515_v53 = vsel %vm514_vm3, %v1727_v47, 4 }
 0x36d   : > { %v516_v54 = vsel %vm486_vm4, %v515_v53, 2147483647 }
 0x36e   : > { %v518_v56 = vshra.s32 %v516_v54, 16  ;;  %v517_v6 = vand.u32 65535, %v516_v54 }
 0x370   : > { %v520_v57 = vcvt.s32.f32 %v518_v56  ;;  %v519_v8 = vcvt.s32.f32 %v517_v6 }
 0x372   : > { %521 = vmin.xlane.f32.xlu0 %v520_v57 }
 0x37a   : > { %825 = vmin.xlane.f32.xlu0 %v824_v60 }
 0x3a7   : > { %v722_v62 = vpop.xlane.xlu1 %721 }
 0x3a8   : > { %vm723_vm2 = vcmp.eq.f32.partialorder %v720_v45, %v722_v62  ;;  %v728_v16 = vcvt.f32.s32 %v722_v62 }
 0x3a9   : > { %v724_v0 = vsel %vm723_vm2, %v719_v63, inf }
 0x3aa   : > { %725 = vmin.xlane.f32.xlu0 %v724_v0  ;;  %v729_v19 = vshll.u32 %v728_v16, 16  ;;  %v759_v16 = vmul.f32 1.442695, %v1741_v22 }
 0x3ac   : > { %1289 = vpow2.f32 %v759_v16 }
 0x3b9   : > { %v618_v3 = vpop.xlane.xlu2 %617 }
 0x3ba   : > { %vm619_vm13 = vcmp.eq.f32.partialorder %v616_v50, %v618_v3  ;;  %v624_v21 = vcvt.f32.s32 %v618_v3 }
 0x3bb   : > { %v620_v5 = vsel %vm619_vm13, %v615_v4, inf }
 0x3bc   : > { %621 = vmin.xlane.f32.xlu2 %v620_v5  ;;  %v625_v26 = vshll.u32 %v624_v21, 16 }
 0x3be   : > { %629 = vrot.lane.b32.xlu0 %v1736_v17, %s1509_s20 }
 0x3bf   : > { %v734_v23 = vpop.permute.xlu1 %733 }
 0x3e5   : > { %v522_v7 = vpop.xlane.xlu0 %521 }
 0x3e6   : > { %vm523_vm1 = vcmp.eq.f32.partialorder %v520_v57, %v522_v7  ;;  %v528_v33 = vcvt.f32.s32 %v522_v7 }
 0x3e7   : > { %v524_v9 = vsel %vm523_vm1, %v519_v8, inf }
 0x3e8   : > { %525 = vmin.xlane.f32.xlu0 %v524_v9  ;;  %v529_v36 = vshll.u32 %v528_v33, 16 }
 0x3ed   : > { %v826_v11 = vpop.xlane.xlu0 %825 }
 0x3ee   : > { %vm827_vm14 = vcmp.eq.f32.partialorder %v824_v60, %v826_v11  ;;  %v832_v40 = vcvt.f32.s32 %v826_v11 }
 0x3ef   : > { %v828_v13 = vsel %vm827_vm14, %v823_v12, inf }
 0x3f0   : > { %829 = vmin.xlane.f32.xlu2 %v828_v13  ;;  %v833_v45 = vshll.u32 %v832_v40, 16 }
 0x408   : > { %837 = vrot.lane.b32.xlu2 %v1731_v2, %s1511_s26 }
 0x41d   : > { %v726_v14 = vpop.xlane.xlu0 %725 }
 0x41e   : > { %v727_v18 = vcvt.f32.s32 %v726_v14 }
 0x420   : > { %v1769_v20 = vadd.s32 %v729_v19, %v727_v18  ;;  %v655_v18 = vmul.f32 1.442695, %v1736_v17  ;;  %v1290_v19 = vpop.eup %1289  ;;  %v863_v17 = vmul.f32 1.442695, %v1731_v2 }
 0x422   : > { %vm731_vm15 = vcmp.eq.s32.totalorder %v1727_v47, %v1769_v20  ;;  %1291 = vpow2.f32 %v655_v18 }
 0x423   : > { %v736_v24 = vsel %vm731_vm15, -inf, %v734_v23  ;;  %1293 = vpow2.f32 %v863_v17 }
 0x424   : > { %v737_v28 = vsel %vm486_vm4, %v736_v24, -inf }
 0x428   : > { %v1292_v21 = vpop.eup %1291 }
 0x42f   : > { %v622_v25 = vpop.xlane.xlu2 %621 }
 0x430   : > { %v623_v27 = vcvt.f32.s32 %v622_v25  ;;  %v630_v30 = vpop.permute.xlu0 %629 }
 0x431   : > { %738 = vmax.xlane.f32.xlu2 %v737_v28 }
 0x432   : > { %v1777_v29 = vadd.s32 %v625_v26, %v623_v27 }
 0x434   : > { %vm627_vm5 = vcmp.eq.s32.totalorder %v1727_v47, %v1777_v29  ;;  %v555_v29 = vmul.f32 1.442695, %v1750_v35 }
 0x435   : > { %v632_v31 = vsel %vm627_vm5, -inf, %v630_v30 }
 0x436   : > { %v633_v32 = vsel %vm486_vm4, %v632_v31, -inf  ;;  %1295 = vpow2.f32 %v555_v29 }
 0x437   : > { %634 = vmax.xlane.f32.xlu1 %v633_v32 }
 0x45b   : > { %v526_v34 = vpop.xlane.xlu0 %525 }
 0x45c   : > { %v527_v37 = vcvt.f32.s32 %v526_v34 }
 0x45e   : > { %v1785_v39 = vadd.s32 %v529_v36, %v527_v37 }
 0x460   : > { %vm531_vm6 = vcmp.eq.s32.totalorder %v1727_v47, %v1785_v39 }
 0x461   : > { %v532_v41 = vsel %vm531_vm6, -inf, %v1750_v35 }
 0x462   : > { %v533_v42 = vsel %vm486_vm4, %v532_v41, -inf }
 0x463   : > { %v830_v43 = vpop.xlane.xlu2 %829  ;;  %534 = vmax.xlane.f32.xlu1 %v533_v42 }
 0x464   : > { %v831_v44 = vcvt.f32.s32 %v830_v43 }
 0x466   : > { %v1794_v38 = vadd.s32 %v833_v45, %v831_v44 }
 0x468   : > { %vm835_vm7 = vcmp.eq.s32.totalorder %v1727_v47, %v1794_v38 }
 0x46b   : > { %v838_v46 = vpop.permute.xlu2 %837 }
 0x46c   : > { %v840_v48 = vsel %vm835_vm7, -inf, %v838_v46 }
 0x46d   : > { %v841_v49 = vsel %vm486_vm4, %v840_v48, -inf }
 0x46e   : > { %842 = vmax.xlane.f32.xlu0 %v841_v49 }
 0x4a4   : > { %v739_v50 = vpop.xlane.xlu2 %738 }
 0x4a5   : > { %vm740_vm8 = vcmp.eq.f32.partialorder %v736_v24, %v739_v50 }
 0x4a6   : > { %v741_v51 = vsel %vm740_vm8, %v1727_v47, 4 }
 0x4a7   : > { %v742_v52 = vsel %vm486_vm4, %v741_v51, 2147483647 }
 0x4a8   : > { %v744_v53 = vshra.s32 %v742_v52, 16  ;;  %v743_v7 = vand.u32 65535, %v742_v52 }
 0x4aa   : > { %v635_v54 = vpop.xlane.xlu1 %634  ;;  %v746_v55 = vcvt.s32.f32 %v744_v53  ;;  %v745_v9 = vcvt.s32.f32 %v743_v7 }
 0x4ab   : > { %vm636_vm9 = vcmp.eq.f32.partialorder %v632_v31, %v635_v54  ;;  %v1294_v31 = vpop.eup %1293 }
 0x4ac   : > { %v637_v56 = vsel %vm636_vm9, %v1727_v47, 4  ;;  %747 = vmin.xlane.f32.xlu0 %v746_v55  ;;  %v1296_v35 = vpop.eup %1295 }
 0x4ad   : > { %v638_v57 = vsel %vm486_vm4, %v637_v56, 2147483647 }
 0x4ae   : > { %v640_v58 = vshra.s32 %v638_v57, 16  ;;  %v639_v11 = vand.u32 65535, %v638_v57 }
 0x4b0   : > { %v642_v59 = vcvt.s32.f32 %v640_v58  ;;  %v641_v13 = vcvt.s32.f32 %v639_v11 }
 0x4b2   : > { %643 = vmin.xlane.f32.xlu2 %v642_v59 }
 0x4d6   : > { %v535_v60 = vpop.xlane.xlu1 %534 }
 0x4d7   : > { %vm536_vm10 = vcmp.eq.f32.partialorder %v532_v41, %v535_v60 }
 0x4d8   : > { %v537_v61 = vsel %vm536_vm10, %v1727_v47, 4 }
 0x4d9   : > { %v538_v62 = vsel %vm486_vm4, %v537_v61, 2147483647 }
 0x4da   : > { %v540_v63 = vshra.s32 %v538_v62, 16  ;;  %v539_v28 = vand.u32 65535, %v538_v62 }
 0x4dc   : > { %v542_v0 = vcvt.s32.f32 %v540_v63  ;;  %v541_v22 = vcvt.s32.f32 %v539_v28 }
 0x4de   : > { %543 = vmin.xlane.f32.xlu2 %v542_v0 }
 0x4e1   : > { %v843_v1 = vpop.xlane.xlu0 %842 }
 0x4e2   : > { %vm844_vm11 = vcmp.eq.f32.partialorder %v840_v48, %v843_v1 }
 0x4e3   : > { %v845_v3 = vsel %vm844_vm11, %v1727_v47, 4 }
 0x4e4   : > { %v846_v4 = vsel %vm486_vm4, %v845_v3, 2147483647 }
 0x4e5   : > { %v848_v5 = vshra.s32 %v846_v4, 16  ;;  %v847_v23 = vand.u32 65535, %v846_v4 }
 0x4e7   : > { %v850_v6 = vcvt.s32.f32 %v848_v5  ;;  %v849_v25 = vcvt.s32.f32 %v847_v23 }
 0x4e9   : > { %851 = vmin.xlane.f32.xlu1 %v850_v6 }
 0x51f   : > { %v748_v8 = vpop.xlane.xlu0 %747 }
 0x520   : > { %vm749_vm12 = vcmp.eq.f32.partialorder %v746_v55, %v748_v8  ;;  %v754_v33 = vcvt.f32.s32 %v748_v8 }
 0x521   : > { %v750_v10 = vsel %vm749_vm12, %v745_v9, inf }
 0x522   : > { %751 = vmin.xlane.f32.xlu1 %v750_v10  ;;  %v755_v41 = vshll.u32 %v754_v33, 16 }
 0x525   : > { %v644_v12 = vpop.xlane.xlu2 %643 }
 0x526   : > { %vm645_vm3 = vcmp.eq.f32.partialorder %v642_v59, %v644_v12  ;;  %v650_v36 = vcvt.f32.s32 %v644_v12 }
 0x527   : > { %v646_v14 = vsel %vm645_vm3, %v641_v13, inf }
 0x528   : > { %647 = vmin.xlane.f32.xlu0 %v646_v14  ;;  %v651_v42 = vshll.u32 %v650_v36, 16 }
 0x53b   : > { %762 = vrot.lane.b32.xlu1 %v1290_v19, %s1510_s21  ;;  %s1046_s21 = scalar_lea.hbm %s1908_s10, %s1176_s25 }
 0x53c   : > { %658 = vrot.lane.b32.xlu0 %v1292_v21, %s1509_s20 }
 0x551   : > { %v544_v27 = vpop.xlane.xlu2 %543 }
 0x552   : > { %vm545_vm13 = vcmp.eq.f32.partialorder %v542_v0, %v544_v27  ;;  %v550_v55 = vcvt.f32.s32 %v544_v27 }
 0x553   : > { %v546_v30 = vsel %vm545_vm13, %v541_v22, inf }
 0x554   : > { %v551_v57 = vshll.u32 %v550_v55, 16 }
 0x55c   : > { %v852_v24 = vpop.xlane.xlu1 %851 }
 0x55d   : > { %vm853_vm2 = vcmp.eq.f32.partialorder %v850_v6, %v852_v24  ;;  %v858_v20 = vcvt.f32.s32 %v852_v24 }
 0x55e   : > { %v854_v26 = vsel %vm853_vm2, %v849_v25, inf }
 0x55f   : > { %855 = vmin.xlane.f32.xlu2 %v854_v26  ;;  %v859_v52 = vshll.u32 %v858_v20, 16 }
 0x566   : > { %547 = vmin.xlane.f32.xlu0 %v546_v30 }
 0x577   : > { %866 = vrot.lane.b32.xlu2 %v1294_v31, %s1511_s26  ;;  %s415_s26 = scalar_lea.vmem [#allocation10], %s1163_s24 }
 0x595   : > { %v752_v32 = vpop.xlane.xlu1 %751 }
 0x596   : > { %v753_v37 = vcvt.f32.s32 %v752_v32 }
 0x598   : > { %v756_v43 = vadd.s32 %v755_v41, %v753_v37  ;;  %v934_v41 = vld [vmem:[#allocation7 + $0x8] sm:$0xff] }
 0x599   : > { %953 = vmatpush.msra.mxu3 %v934_v41 }
 0x59a   : > { %vm757_vm1 = vcmp.eq.s32.totalorder %v1727_v47, %v756_v43  ;;  %v933_v43 = vld [vmem:[#allocation7] sm:$0xff] }
 0x59b   : > { %v648_v34 = vpop.xlane.xlu0 %647  ;;  %vm758_vm8 = vmor %vm731_vm15, %vm757_vm1  ;;  %954 = vmatpush.msra.mxu3 %v933_v43 }
 0x59c   : > { %v649_v40 = vcvt.f32.s32 %v648_v34 }
 0x59e   : > { %v652_v44 = vadd.s32 %v651_v42, %v649_v40 }
 0x5a0   : > { %vm653_vm14 = vcmp.eq.s32.totalorder %v1727_v47, %v652_v44 }
 0x5a1   : > { %vm654_vm9 = vmor %vm627_vm5, %vm653_vm14 }
 0x5ad   : > { %v763_v2 = vpop.permute.xlu1 %762 }
 0x5ae   : > { %v1821_v45 = vsel %vm758_vm8, %v763_v2, 0.0  ;;  %v659_v46 = vpop.permute.xlu0 %658 }
 0x5af   : > { %v1826_v48 = vsel %vm654_vm9, %v659_v46, 0.0  ;;  %v766_v49 = vsel %vm486_vm4, %v1821_v45, 0.0 }
 0x5b0   : > { %767 = vadd.xlane.f32.xlu2 %v766_v49  ;;  %v662_v50 = vsel %vm486_vm4, %v1826_v48, 0.0 }
 0x5b1   : > { %663 = vadd.xlane.f32.xlu1 %v662_v50 }
 0x5d2   : > { %v856_v51 = vpop.xlane.xlu2 %855 }
 0x5d3   : > { %v857_v53 = vcvt.f32.s32 %v856_v51 }
 0x5d5   : > { %v860_v54 = vadd.s32 %v859_v52, %v857_v53 }
 0x5d7   : > { %vm861_vm15 = vcmp.eq.s32.totalorder %v1727_v47, %v860_v54 }
 0x5d8   : > { %vm862_vm5 = vmor %vm835_vm7, %vm861_vm15 }
 0x5d9   : > { %v548_v56 = vpop.xlane.xlu0 %547 }
 0x5da   : > { %v549_v58 = vcvt.f32.s32 %v548_v56  ;;  %v867_v59 = vpop.permute.xlu2 %866 }
 0x5db   : > { %v1837_v60 = vsel %vm862_vm5, %v867_v59, 0.0  ;;  %v1272_v59 = vld [vmem:[%s1904_s6] ss:$0 sm:$0xff] }
 0x5dc   : > { %v552_v61 = vadd.s32 %v551_v57, %v549_v58  ;;  %v870_v62 = vsel %vm486_vm4, %v1837_v60, 0.0 }
 0x5dd   : > { %871 = vadd.xlane.f32.xlu0 %v870_v62 }
 0x5de   : > { %vm553_vm10 = vcmp.eq.s32.totalorder %v1727_v47, %v552_v61 }
 0x5df   : > { %vm554_vm11 = vmor %vm531_vm6, %vm553_vm10 }
 0x5e0   : > { %v1845_v63 = vsel %vm554_vm11, %v1296_v35, 0.0 }
 0x5e1   : > { %v558_v38 = vsel %vm486_vm4, %v1845_v63, 0.0 }
 0x5e5   : > { %559 = vadd.xlane.f32.xlu0 %v558_v38  ;;  %v982_v38 = vld [vmem:[#allocation8 + $0x38] sm:$0xff] }
 0x5e6   : > { %1024 = vmatpush.msrb.mxu0 %v982_v38 }
 0x623   : > { %v768_v0 = vpop.xlane.xlu2 %767 }
 0x624   : > { %1297 = vrcp.f32 %v768_v0  ;;  %v664_v1 = vpop.xlane.xlu1 %663  ;;  %v780_v8 = vand.u32 2147483648, %v768_v0  ;;  %v778_v10 = vand.u32 2147483647, %v768_v0  ;;  %vm774_vm12 = vweird.f32 %v768_v0 }
 0x625   : > { %1299 = vrcp.f32 %v664_v1  ;;  %v676_v39 = vand.u32 2147483648, %v664_v1  ;;  %v674_v12 = vand.u32 2147483647, %v664_v1  ;;  %vm670_vm3 = vweird.f32 %v664_v1 }
 0x626   : > { %v781_v14 = vor.u32 1.1754944e-38, %v780_v8  ;;  %vm779_vm13 = vcmp.eq.f32.partialorder %v778_v10, 8.507059e+37 }
 0x627   : > { %v677_v18 = vor.u32 1.1754944e-38, %v676_v39  ;;  %vm675_vm14 = vcmp.eq.f32.partialorder %v674_v12, 8.507059e+37  ;;  %v983_v12 = vld [vmem:[%s1907_s9] sm:$0x3] }
 0x62a   : > { %v1298_v3 = vpop.eup %1297 }
 0x62b   : > { %v1300_v4 = vpop.eup %1299  ;;  %v770_v5 = vmul.f32 %v1298_v3, %v768_v0  ;;  %vm775_vm6 = vweird.f32 %v1298_v3  ;;  %v979_v0 = vld [vmem:[#allocation8 + $0x20] sm:$0xff] }
 0x62c   : > { %v666_v6 = vmul.f32 %v1300_v4, %v664_v1  ;;  %vm671_vm7 = vweird.f32 %v1300_v4  ;;  %vm776_vm2 = vmor %vm774_vm12, %vm775_vm6  ;;  %vm901_vm12 = vcmask 64512   ;;  %v980_v1 = vld [vmem:[#allocation8 + $0x28] sm:$0xff] }
 0x62d   : > { %v771_v7 = vsub.f32 1.0, %v770_v5  ;;  %vm672_vm1 = vmor %vm670_vm3, %vm671_vm7  ;;  %vm903_vm3 = vcmask 97280   ;;  %1025 = vmatpush.msrb.mxu0 %v980_v1  ;;  %v975_v5 = vld [vmem:[#allocation8] sm:$0xff] }
 0x62e   : > { %v667_v9 = vsub.f32 1.0, %v666_v6  ;;  %v976_v6 = vld [vmem:[#allocation8 + $0x8] sm:$0xff] }
 0x62f   : > { %v772_v47 = vmul.f32 %v1298_v3, %v771_v7 }
 0x630   : > { %v668_v11 = vmul.f32 %v1300_v4, %v667_v9 }
 0x631   : > { %v773_v13 = vadd.f32 %v1298_v3, %v772_v47 }
 0x632   : > { %v669_v16 = vadd.f32 %v1300_v4, %v668_v11 }
 0x633   : > { %v777_v19 = vsel %vm776_vm2, %v1298_v3, %v773_v13  ;;  %vm935_vm2 = vcmask 130048   ;;  %v977_v3 = vld [vmem:[#allocation8 + $0x10] sm:$0xff]  ;;  %v986_v13 = vperm.slane %v983_v12, 1 }
 0x634   : > { %v782_v21 = vsel %vm779_vm13, %v781_v14, %v777_v19  ;;  %v673_v23 = vsel %vm672_vm1, %v1300_v4, %v669_v16  ;;  %v978_v4 = vld [vmem:[#allocation8 + $0x18] sm:$0xff] }
 0x635   : > { %v783_v24 = vmul.f32 %v782_v21, %v1821_v45  ;;  %v678_v25 = vsel %vm675_vm14, %v677_v18, %v673_v23  ;;  %1026 = vmatpush.msrb.mxu0 %v978_v4 }
 0x636   : > { %v679_v26 = vmul.f32 %v678_v25, %v1826_v48 }
 0x637   : > { %893 = vrot.lane.b32.xlu2 %v783_v24, %s1513_s29  ;;  %1027 = vmatpush.msrb.mxu0 %v976_v6  ;;  %s1050_s29 = sshll.u32 %s1046_s21, 4  ;;  %s1051_s29 = int_to_ptr.hbm [resolvable:$true] %s1050_s29 }
 0x638   : > { %889 = vrot.lane.b32.xlu1 %v679_v26, %s1514_s12  ;;  %s1035_s12 = scalar_lea.sflag [#allocation4], %s413_s2  ;;  %s1439_s18 = sshra.s32 %s1051_s29, 4  ;;  %s1440_s18 = int_to_ptr.hbm [resolvable:$true] %s1439_s18 }
 0x639   : > { %s1441_s17 = scalar_lea.hbm %s1440_s18, 16  ;;  %p1446_p3 = scmp.lt.s32.totalorder %s1440_s18, %s1908_s10 }
 0x63a   : > { %p1442_p0 = scmp.ne.s32.totalorder %s1440_s18, %s1441_s17 }
 0x63c   : > { %p1443_p1 = pnand %p1442_p0, %p1611_p5 }
 0x63e   : > { %p1444_p2 = pneg %p1443_p1 }
 0x650   : > { %v872_v27 = vpop.xlane.xlu0 %871 }
 0x651   : > { %1301 = vrcp.f32 %v872_v27  ;;  %v884_v17 = vand.u32 2147483648, %v872_v27  ;;  %v882_v32 = vand.u32 2147483647, %v872_v27  ;;  %vm878_vm9 = vweird.f32 %v872_v27 }
 0x653   : > { %v885_v34 = vor.u32 1.1754944e-38, %v884_v17  ;;  %vm883_vm5 = vcmp.eq.f32.partialorder %v882_v32, 8.507059e+37 }
 0x657   : > { %v1302_v28 = vpop.eup %1301 }
 0x658   : > { %v874_v22 = vmul.f32 %v1302_v28, %v872_v27  ;;  %vm879_vm8 = vweird.f32 %v1302_v28  ;;  %v560_v42 = vpop.xlane.xlu0 %559 }
 0x659   : > { %vm880_vm15 = vmor %vm878_vm9, %vm879_vm8  ;;  %1303 = vrcp.f32 %v560_v42  ;;  %v572_v49 = vand.u32 2147483648, %v560_v42  ;;  %vm566_vm11 = vweird.f32 %v560_v42  ;;  %v570_v50 = vand.u32 2147483647, %v560_v42 }
 0x65a   : > { %v875_v30 = vsub.f32 1.0, %v874_v22 }
 0x65b   : > { %v573_v51 = vor.u32 1.1754944e-38, %v572_v49  ;;  %vm571_vm7 = vcmp.eq.f32.partialorder %v570_v50, 8.507059e+37 }
 0x65c   : > { %v876_v31 = vmul.f32 %v1302_v28, %v875_v30 }
 0x65e   : > { %v877_v33 = vadd.f32 %v1302_v28, %v876_v31 }
 0x65f   : > { %v1304_v44 = vpop.eup %1303 }
 0x660   : > { %v881_v36 = vsel %vm880_vm15, %v1302_v28, %v877_v33  ;;  %v562_v2 = vmul.f32 %v1304_v44, %v560_v42  ;;  %vm567_vm10 = vweird.f32 %v1304_v44 }
 0x661   : > { %v886_v37 = vsel %vm883_vm5, %v885_v34, %v881_v36  ;;  %vm568_vm6 = vmor %vm566_vm11, %vm567_vm10 }
 0x662   : > { %v887_v40 = vmul.f32 %v886_v37, %v1837_v60  ;;  %v563_v45 = vsub.f32 1.0, %v562_v2  ;;  %v930_v60 = vpop.f32.mrf.mxu2 }
 0x663   : > { %v931_v61 = vadd.f32 %v1272_v59, %v930_v60 }
 0x664   : > { %897 = vrot.lane.b32.xlu0 %v887_v40, %s1512_s27  ;;  %v564_v46 = vmul.f32 %v1304_v44, %v563_v45  ;;  %s1048_s27 = sshll.u32 %s415_s26, 4  ;;  %s1049_s27 = int_to_ptr.vmem [resolvable:$true] %s1048_s27 }
 0x666   : > { %v565_v48 = vadd.f32 %v1304_v44, %v564_v46 }
 0x668   : > { %v569_v20 = vsel %vm568_vm6, %v1304_v44, %v565_v48 }
 0x669   : > { %v574_v52 = vsel %vm571_vm7, %v573_v51, %v569_v20 }
 0x66a   : > { %v575_v54 = vmul.f32 %v574_v52, %v1845_v63  ;;  %v981_v63 = vld [vmem:[#allocation8 + $0x30] sm:$0xff] }
 0x66b   : > { %1004 = vmatpush.msrb.mxu3 %v981_v63 }
 0x66d   : > { %1005 = vmatpush.msrb.mxu3 %v979_v0 }
 0x66f   : > { %1006 = vmatpush.msrb.mxu3 %v977_v3 }
 0x671   : > { %1007 = vmatpush.msrb.mxu3 %v975_v5 }
 0x691   : > { %v894_v29 = vpop.permute.xlu2 %893 }
 0x6aa   : > { %v890_v53 = vpop.permute.xlu1 %889 }
 0x6ab   : > { %v900_v55 = vsel %vm486_vm4, %v575_v54, %v890_v53 }
 0x6ac   : > { %v902_v57 = vsel %vm901_vm12, %v900_v55, %v894_v29 }
 0x6d6   : > { %v898_v56 = vpop.permute.xlu0 %897 }
 0x6d7   : > { %v904_v58 = vsel %vm903_vm3, %v902_v57, %v898_v56 }
 0x6d8   : > { %1168 = vmatmul.msk.f32.vlgmr.msra.gmra.mxu3 %vm935_vm2, %v904_v58 }
 0x75b   : > { %v956_v62 = vpop.f32.mrf.mxu3 }
 0x75c   : > { %v959_v35 = vmul.f32 %v956_v62, %v931_v61 }
 0x75e   : > { %970 = vrot.lane.b32.xlu0 %v959_v35, %s1515_s30  ;;  %966 = vrot.lane.b32.xlu1 %v959_v35, %s1516_s5  ;;  %s1445_s5 = scalar_lea.hbm %s1908_s10, 32 }
 0x75f   : > { %962 = vrot.lane.b32.xlu2 %v959_v35, %s1517_s22  ;;  %p1447_p4 = scmp.lt.s32.totalorder %s1445_s5, %s1441_s17 }
 0x761   : > { %p1448_p7 = por %p1447_p4, %p1446_p3 }
 0x763   : > { %p1449_p8 = pnand %p1448_p7, %p1444_p2 }
 0x7b9   : > { %v963_v7 = vpop.permute.xlu2 %962 }
 0x7ba   : > { %v965_v8 = vadd.f32 %v963_v7, %v959_v35 }
 0x7d0   : > { %v967_v9 = vpop.permute.xlu1 %966  ;;  %v971_v39 = vpop.permute.xlu0 %970 }
 0x7d1   : > { %v969_v47 = vadd.f32 %v967_v9, %v965_v8 }
 0x7d3   : > { %v973_v10 = vadd.f32 %v971_v39, %v969_v47 }
 0x7d5   : > { %v974_v11 = vadd.f32 %v973_v10, %v1698_v15  ;;  %v985_v15 = vperm.slane %v983_v12, 0 }
 0x7d7   : > { %1169 = vmatmul.msk.f32.vlgmr.msrb.gmra.mxu3 %vm429_vm0, %v974_v11  ;;  %1170 = vmatmul.msk.f32.vlgmr.msrb.gmra.mxu0 %vm429_vm0, %v974_v11 }
 0x854   : > { %v1029_v14 = vpop.f32.mrf.mxu0 }
 0x855   : > { %v1030_v16 = vadd.f32 %v1029_v14, %v986_v13 }
 0x857   : > { %1033 = vst [vmem:[%s415_s26 + $0x8] sm:$0xff] %v1030_v16 }
 0x85a   : > { %v1009_v18 = vpop.f32.mrf.mxu3 }
 0x85b   : > { %v1010_v19 = vadd.f32 %v1009_v18, %v985_v15 }
 0x85d   : > { %1032 = vst [vmem:[%s415_s26] sm:$0xff] %v1010_v19 }
 0x85e   : > { %1452 = shalt.err (!%p1449_p8)
}
 0x85f   : > { %1193 = dma.vmem_to_hbm [thread:$0]  (%p1611_p5), %s1049_s27, 256, %s1051_s29, %s1035_s12  }
 0x860 PF: > { %p1220_p9 = scmp.ge.s32.totalorder %s1499_s16, 2  ;;  %s1062_s19 = sand.u32 1, %s1487_s13  }
 0x861   : > { %s1063_s24 = scalar_lea.sflag [#allocation4], %s1062_s19 }
 0x862   : > { %p1209_p10 = pnand %p1220_p9, %p1615_p6 }
 0x864   : > { %p1210_p11 = pneg %p1209_p10 }
 0x866   : > { %1482 = dma.done.wait (%p1210_p11), %s1063_s24, 256  }
 0x867   : > { %1484 = vsyncadd (%p1210_p11), %s1063_s24, 4294967040  ;;  %s1926_s16 = sld [smem:[#allocation16_spill]]  ;;  %s1929_s13 = smov %s1491_s14 }
 0x868   : > { %s1927_s25 = sld [smem:[#allocation15_spill]] }
 0x869   : > { %s1928_s15 = sld [smem:[#allocation17_spill]] }
 0x86d   : > { %p23_p12 = scmp.ge.s32.totalorder %s1926_s16, 4  }
 0x86e   : > { %s1930_s14 = smov %s1927_s25 }
 0x86f   :  { %25 = sbr.rel (!%p23_p12) target bundleno = 9 (0x9), region = 112 }
 0x874   :  { %1069 = vsyncpa [#allocation3], 1 }
 0x875   :  { %1071 = vsyncpa [#allocation3 + $0x1], 1 }
 0x876   :  { %1072 = vsyncpa [#allocation6], 1 }
 0x877   :  { %1073 = vsyncpa [#allocation9], 1 }
 0x878   :  { %1074 = vsyncpa [#allocation4], 1 }
 0x879   :  { %1076 = vsyncpa [#allocation4 + $0x1], 1 }

</bundles_post_ra>
